<compile_context>
chip_gen: v6e
topology: v6e:2x2x1
jax: 0.10.0
libtpu: 0.0.40
codegen_flags: <defaults>
</compile_context>

<pallas_src>
import functools

import jax
import jax.numpy as jnp
from jax.experimental import pallas as pl
from jax.experimental.pallas import tpu as pltpu

IN_FEATURES = 2048
LANE = 128
SUBLANE = 8
MAX_TILE_B = 1024  # 1024x2048 f32 x tile = 8 MiB (16 MiB double-buffered)


def _round_up(x, m):
    return (x + m - 1) // m * m


def _linear_sigmoid_kernel(x_ref, w_ref, b_ref, o_ref):
    # x_ref: (TILE_B, K) f32       w_ref: (K, C_pad) bf16 (VMEM-resident)
    # b_ref: (1, C_pad) f32        o_ref: (TILE_B, C_pad) f32
    x_bf16 = x_ref[...].astype(jnp.bfloat16)      # in-kernel cast (VPU, hidden under DMA)
    acc = jnp.dot(x_bf16, w_ref[...], preferred_element_type=jnp.float32)
    z = acc + b_ref[...]                          # broadcast bias over rows
    # Exact sigmoid: exp goes to the EUP slot; the divide is negligible and
    # everything here is hidden under the x HBM stream.
    o_ref[...] = (1.0 / (1.0 + jnp.exp(-z))).astype(o_ref.dtype)


def prepare_params(weight, bias):
    """One-time parameter prep (outside the hot path).

    weight: (C, 2048) f32 (PyTorch nn.Linear layout), bias: (C,) f32.
    Returns (2048, C_pad) bf16 weight and (1, C_pad) f32 bias, zero-padded
    to a lane-dense (multiple-of-128) class dimension.
    """
    C, K = weight.shape
    assert K == IN_FEATURES
    c_pad = _round_up(C, LANE)
    w_t = jnp.zeros((K, c_pad), jnp.bfloat16).at[:, :C].set(
        weight.T.astype(jnp.bfloat16))
    b2d = jnp.zeros((1, c_pad), jnp.float32).at[:, :C].set(
        bias.astype(jnp.float32))
    return w_t, b2d


@functools.partial(jax.jit, static_argnames=("num_classes",))
def linear_classifier_apply(x, w_padded, b_padded, *, num_classes):
    """out = sigmoid(x @ W + b).

    x: (B, 2048) f32; w_padded: (2048, C_pad) bf16; b_padded: (1, C_pad) f32.
    Returns (B, num_classes) f32.
    """
    B, K = x.shape
    assert K == IN_FEATURES
    c_pad = w_padded.shape[1]

    # Batch tile: aim for >= 2 grid steps (v7x megacore), 8-sublane aligned,
    # capped at MAX_TILE_B. No batch padding: cdiv grid + Pallas block clipping
    # handles the partial tail tile (its garbage rows are never written out).
    tile_b = min(MAX_TILE_B, max(SUBLANE, _round_up(pl.cdiv(B, 2), SUBLANE)))
    grid = (pl.cdiv(B, tile_b),)

    cost = pl.CostEstimate(
        flops=2 * B * K * c_pad,
        transcendentals=B * c_pad,
        bytes_accessed=(B * K * 4            # f32 x (read once, cast in-kernel)
                        + K * c_pad * 2      # bf16 W (VMEM-resident)
                        + c_pad * 4          # f32 bias
                        + B * c_pad * 4),    # f32 output
    )

    out = pl.pallas_call(
        _linear_sigmoid_kernel,
        out_shape=jax.ShapeDtypeStruct((B, c_pad), jnp.float32),
        grid=grid,
        in_specs=[
            pl.BlockSpec((tile_b, K), lambda i: (i, 0)),   # batch-tiled f32 x
            pl.BlockSpec((K, c_pad), lambda i: (0, 0)),    # W: VMEM-resident
            pl.BlockSpec((1, c_pad), lambda i: (0, 0)),    # bias: VMEM-resident
        ],
        out_specs=pl.BlockSpec((tile_b, c_pad), lambda i: (i, 0)),
        compiler_params=pltpu.CompilerParams(
            dimension_semantics=("parallel",),
            # 1024-row f32 x tiles double-buffered (16 MiB) + W + outputs
            # ~= 18 MiB; raise the scoped limit so v5e (16 MiB default) fits.
            vmem_limit_bytes=32 * 1024 * 1024),
        cost_estimate=cost,
    )(x.astype(jnp.float32), w_padded, b_padded)

    # TODO(synk): for very large num_classes (C_pad >~ 4k) add a class-dim grid
    # axis so W need not be fully VMEM-resident (matters on v7x's 64 MiB VMEM).
    return out[:, :num_classes]


if __name__ == "__main__":
    B = 8              # batch
    C = 16             # output_class

    key = jax.random.PRNGKey(0)
    kx, kw, kb = jax.random.split(key, 3)

    # Deterministic synthetic parameters (shapes from nn.Linear(2048, C)).
    x = jax.random.normal(kx, (B, IN_FEATURES), dtype=jnp.float32)
    bound = 1.0 / (IN_FEATURES ** 0.5)
    weight = jax.random.uniform(kw, (C, IN_FEATURES), dtype=jnp.float32,
                                minval=-bound, maxval=bound)
    bias = jax.random.uniform(kb, (C,), dtype=jnp.float32,
                              minval=-bound, maxval=bound)

    # One-time parameter prep (pre-transpose + lane padding + bf16 cast).
    w_padded, b_padded = prepare_params(weight, bias)

    out = jax.block_until_ready(
        linear_classifier_apply(x, w_padded, b_padded, num_classes=C))

    # Sanity check against plain-JAX f32 reference (bf16 MXU inputs -> relaxed
    # tolerance; exact sigmoid epilogue, so error is cast-only).
    ref = jax.nn.sigmoid(x @ weight.T + bias)
    assert out.shape == (B, C)
    assert jnp.allclose(out, ref, atol=2e-2, rtol=2e-2), (
        float(jnp.max(jnp.abs(out - ref))))

    print("KERNEL_OK")
</pallas_src>

<mosaic_0001>
module attributes {stable_mosaic.version = 11 : i64} {
  func.func @_linear_sigmoid_kernel(%arg0: i32, %arg1: memref<8x2048xf32, #tpu.memory_space<vmem>>, %arg2: memref<2048x128xbf16, #tpu.memory_space<vmem>>, %arg3: memref<1x128xf32, #tpu.memory_space<vmem>>, %arg4: memref<8x128xf32, #tpu.memory_space<vmem>>) attributes {dimension_semantics = [#tpu.dimension_semantics<parallel>], iteration_bounds = array<i64: 1>, scalar_prefetch = 0 : i64, scratch_operands = 0 : i64, tpu.core_type = #tpu.core_type<tc>, window_params = [{transform_indices = @transform_0, window_bounds = array<i64: 8, 2048>}, {pipeline_mode = #tpu.pipeline_mode<synchronous>, transform_indices = @transform_1, window_bounds = array<i64: 2048, 128>}, {pipeline_mode = #tpu.pipeline_mode<synchronous>, transform_indices = @transform_2, window_bounds = array<i64: 1, 128>}, {transform_indices = @transform_3, window_bounds = array<i64: 8, 128>}]} {
    %c0 = arith.constant 0 : index
    %c0_0 = arith.constant 0 : index
    %0 = vector.load %arg1[%c0, %c0_0] : memref<8x2048xf32, #tpu.memory_space<vmem>>, vector<8x2048xf32>
    %1 = arith.truncf %0 : vector<8x2048xf32> to vector<8x2048xbf16>
    %c0_1 = arith.constant 0 : index
    %c0_2 = arith.constant 0 : index
    %2 = vector.load %arg2[%c0_1, %c0_2] : memref<2048x128xbf16, #tpu.memory_space<vmem>>, vector<2048x128xbf16>
    %cst = arith.constant dense<0.000000e+00> : vector<8x128xf32>
    %3 = tpu.matmul %1, %2, %cst {dimension_numbers = #tpu.dot_dimension_numbers<[1], [0], [0], [1], [0, 0, 1, 1], [], []>} : vector<8x2048xbf16>, vector<2048x128xbf16>, vector<8x128xf32> -> vector<8x128xf32>
    %c0_3 = arith.constant 0 : index
    %c0_4 = arith.constant 0 : index
    %4 = vector.load %arg3[%c0_3, %c0_4] : memref<1x128xf32, #tpu.memory_space<vmem>>, vector<1x128xf32>
    %5 = vector.broadcast %4 : vector<1x128xf32> to vector<8x128xf32>
    %6 = arith.addf %3, %5 : vector<8x128xf32>
    %cst_5 = arith.constant 0.000000e+00 : f32
    %7 = vector.broadcast %cst_5 : f32 to vector<8x128xf32>
    %8 = arith.subf %7, %6 : vector<8x128xf32>
    %9 = math.exp %8 : vector<8x128xf32>
    %cst_6 = arith.constant 1.000000e+00 : f32
    %10 = vector.broadcast %cst_6 : f32 to vector<8x128xf32>
    %11 = arith.addf %10, %9 : vector<8x128xf32>
    %cst_7 = arith.constant 1.000000e+00 : f32
    %12 = vector.broadcast %cst_7 : f32 to vector<8x128xf32>
    %13 = arith.divf %12, %11 : vector<8x128xf32>
    %c0_8 = arith.constant 0 : index
    %c0_9 = arith.constant 0 : index
    %14 = vector.load %arg4[%c0_8, %c0_9] : memref<8x128xf32, #tpu.memory_space<vmem>>, vector<8x128xf32>
    tpu.vector_store %arg4[%c0_8, %c0_9], %13 {strides = array<i32>} : memref<8x128xf32, #tpu.memory_space<vmem>>, vector<8x128xf32>,
    return
  }
  func.func @transform_0(%arg0: i32) -> (i32, i32) {
    %c0_i32 = arith.constant 0 : i32
    %c0_i32_0 = arith.constant 0 : i32
    return %arg0, %c0_i32 : i32, i32
  }
  func.func @transform_1(%arg0: i32) -> (i32, i32) {
    %c0_i32 = arith.constant 0 : i32
    %c0_i32_0 = arith.constant 0 : i32
    %c0_i32_1 = arith.constant 0 : i32
    return %c0_i32, %c0_i32_0 : i32, i32
  }
  func.func @transform_2(%arg0: i32) -> (i32, i32) {
    %c0_i32 = arith.constant 0 : i32
    %c0_i32_0 = arith.constant 0 : i32
    %c0_i32_1 = arith.constant 0 : i32
    return %c0_i32, %c0_i32_0 : i32, i32
  }
  func.func @transform_3(%arg0: i32) -> (i32, i32) {
    %c0_i32 = arith.constant 0 : i32
    %c0_i32_0 = arith.constant 0 : i32
    return %arg0, %c0_i32 : i32, i32
  }
}

</mosaic_0001>

<bundles_post_ra>
// kernel: linear_classifier_apply.1
= control target key start
LH: loop header
LB: loop body
LE: loop exit
PB: predicated region body
PF: predicated region fallthrough
CT: control target
= control target key end

     0   :  { %8 = vsyncpa [#allocation3], 0  ;;  %s1993_s0 = inlined_call_operand.hbm [shape: f32[8,2048], index: 0, kind: input, shape index: {}]   ;;  %s1994_s1 = inlined_call_operand.hbm [shape: bf16[2048,128], index: 1, kind: input, shape index: {}]   ;;  %s1995_s2 = inlined_call_operand.vmem [shape: f32[1,128], index: 2, kind: input, shape index: {}]   ;;  %s1996_s3 = inlined_call_operand.hbm [shape: f32[8,128], index: 3, kind: output, shape index: {}]  }
   0x1   :  { %9 = vsyncpa [#allocation6], 0 }
   0x2   :  { %10 = vsyncpa [#allocation4], 0  ;;  %s1956_s12 = smov [#allocation2]   ;;  %s1957_s14 = smov [#allocation5]  }
   0x3   :  { %s17_s13 = sshll.u32 %s1956_s12, 4  ;;  %s26_s15 = sshll.u32 %s1957_s14, 4  ;;  %s18_s13 = int_to_ptr.vmem [resolvable:$true] %s17_s13  ;;  %s27_s15 = int_to_ptr.vmem [resolvable:$true] %s26_s15 }
   0x4   :  { %s1898_s16 = scalar_lea.vmem %s18_s13, 2048  ;;  %p1903_p1 = scmp.lt.s32.totalorder %s18_s13, %s18_s13 }
   0x5   :  { %p1899_p0 = scmp.ne.s32.totalorder %s18_s13, %s1898_s16  ;;  %p1904_p2 = scmp.lt.s32.totalorder %s1898_s16, %s1898_s16 }
   0x7   :  { %p1905_p3 = por %p1904_p2, %p1903_p1 }
   0x9   :  { %p1906_p4 = pnand %p1905_p3, %p1899_p0 }
   0xb   :  { %1909 = shalt.err (!%p1906_p4)
}
   0xc   :  { %20 = dma.hbm_to_vmem [thread:$0]  %s1993_s0, 2048, %s18_s13, [#allocation3]  }
   0xd   :  { %s1918_s19 = scalar_lea.vmem %s27_s15, 16384  ;;  %p1923_p6 = scmp.lt.s32.totalorder %s27_s15, %s27_s15 }
   0xe   :  { %p1919_p5 = scmp.ne.s32.totalorder %s27_s15, %s1918_s19  ;;  %p1924_p7 = scmp.lt.s32.totalorder %s1918_s19, %s1918_s19 }
  0x10   :  { %p1925_p8 = por %p1924_p7, %p1923_p6 }
  0x12   :  { %p1926_p9 = pnand %p1925_p8, %p1919_p5 }
  0x14   :  { %1929 = shalt.err (!%p1926_p9)
}
  0x15   :  { %s1958_s20 = smov 64   ;;  %s1959_s21 = smov 4  }
  0x16   :  { %32 = dma.hbm_to_vmem [thread:$0]  %s1994_s1, 16384, %s27_s15, [#allocation6], %s1958_s20, %s1958_s20, %s1959_s21  }
  0x17   :  { %1950 = dma.done.wait [#allocation3], 2048  }
  0x18   :  { %1951 = vsyncadd [#allocation3], 4294965248 }
  0x19   :  { %1952 = dma.done.wait [#allocation6], 16384  }
  0x1a   :  { %1953 = vsyncadd [#allocation6], 4294950912  ;;  %v1758_v0 = vld [vmem:[#allocation5 + $0x78] sm:$0xff]   ;;  %v1762_v4 = vld [vmem:[#allocation5 + $0x70] sm:$0xff]  }
  0x1b   :  { %v1759_v1 = vld [vmem:[#allocation5 + $0xf8] sm:$0xff]   ;;  %1577 = vmatprep.subr.bf16.mxu0 %v1758_v0  ;;  %v1763_v5 = vld [vmem:[#allocation5 + $0xf0] sm:$0xff]   ;;  %v1766_v8 = vld [vmem:[#allocation5 + $0x68] sm:$0xff]  }
  0x1c   :  { %v1760_v2 = vld [vmem:[#allocation5 + $0x38] sm:$0xff]   ;;  %1599 = vmatprep.subr.bf16.mxu1 %v1759_v1  ;;  %v1764_v6 = vld [vmem:[#allocation5 + $0x30] sm:$0xff]   ;;  %v1767_v9 = vld [vmem:[#allocation5 + $0xe8] sm:$0xff]  }
  0x1d   :  { %v1761_v3 = vld [vmem:[#allocation5 + $0xb8] sm:$0xff]   ;;  %1578 = vmatpush3.bf16.msra.mxu0 %v1760_v2  ;;  %v1765_v7 = vld [vmem:[#allocation5 + $0xb0] sm:$0xff]   ;;  %v1768_v10 = vld [vmem:[#allocation5 + $0x28] sm:$0xff]  }
  0x1e   :  { %1600 = vmatpush3.bf16.msra.mxu1 %v1761_v3  ;;  %1579 = vmatprep.subr.bf16.mxu0 %v1762_v4  ;;  %v1769_v11 = vld [vmem:[#allocation5 + $0xa8] sm:$0xff]   ;;  %v1770_v12 = vld [vmem:[#allocation5 + $0x60] sm:$0xff]   ;;  %v1774_v16 = vld [vmem:[#allocation5 + $0x58] sm:$0xff]  }
  0x1f   :  { %1601 = vmatprep.subr.bf16.mxu1 %v1763_v5  ;;  %v1771_v13 = vld [vmem:[#allocation5 + $0xe0] sm:$0xff]   ;;  %v1775_v17 = vld [vmem:[#allocation5 + $0xd8] sm:$0xff]   ;;  %v1778_v20 = vld [vmem:[#allocation5 + $0x50] sm:$0xff]  }
  0x20   :  { %v1772_v14 = vld [vmem:[#allocation5 + $0x20] sm:$0xff]   ;;  %v1776_v18 = vld [vmem:[#allocation5 + $0x18] sm:$0xff]   ;;  %v1779_v21 = vld [vmem:[#allocation5 + $0xd0] sm:$0xff]  }
  0x21   :  { %1580 = vmatpush3.bf16.msra.mxu0 %v1764_v6  ;;  %v1773_v15 = vld [vmem:[#allocation5 + $0xa0] sm:$0xff]   ;;  %v1777_v19 = vld [vmem:[#allocation5 + $0x98] sm:$0xff]   ;;  %v1780_v22 = vld [vmem:[#allocation5 + $0x10] sm:$0xff]  }
  0x22   :  { %1602 = vmatpush3.bf16.msra.mxu1 %v1765_v7  ;;  %1581 = vmatprep.subr.bf16.mxu0 %v1766_v8  ;;  %v1781_v23 = vld [vmem:[#allocation5 + $0x90] sm:$0xff]   ;;  %v1782_v24 = vld [vmem:[#allocation5 + $0x48] sm:$0xff]   ;;  %v1786_v28 = vld [vmem:[#allocation5 + $0x40] sm:$0xff]  }
  0x23   :  { %1603 = vmatprep.subr.bf16.mxu1 %v1767_v9  ;;  %v1783_v25 = vld [vmem:[#allocation5 + $0xc8] sm:$0xff]   ;;  %v1787_v29 = vld [vmem:[#allocation5 + $0xc0] sm:$0xff]   ;;  %v45_v33 = vld [vmem:[#allocation2 + $0x18] sm:$0xff] }
  0x24   :  { %v1784_v26 = vld [vmem:[#allocation5 + $0x8] sm:$0xff]   ;;  %v1788_v30 = vld [vmem:[#allocation5] sm:$0xff]   ;;  %v61_v36 = vpack.c.bf16 %v45_v33, %v45_v33  ;;  %v44_v38 = vld [vmem:[#allocation2 + $0x10] sm:$0xff] }
  0x25   :  { %1582 = vmatpush3.bf16.msra.mxu0 %v1768_v10  ;;  %v1785_v27 = vld [vmem:[#allocation5 + $0x88] sm:$0xff]   ;;  %v1789_v31 = vld [vmem:[#allocation5 + $0x80] sm:$0xff]   ;;  %v60_v39 = vpack.c.bf16 %v44_v38, %v44_v38  ;;  %v1790_v40 = vld [vmem:[#allocation5 + $0x178] sm:$0xff]  }
  0x26   :  { %1604 = vmatpush3.bf16.msra.mxu1 %v1769_v11  ;;  %1583 = vmatprep.subr.bf16.mxu0 %v1770_v12  ;;  %v43_v32 = vld [vmem:[#allocation2 + $0x8] sm:$0xff]  ;;  %v42_v34 = vld [vmem:[#allocation2] sm:$0xff]  ;;  %v1791_v41 = vld [vmem:[#allocation5 + $0x1f8] sm:$0xff]  }
  0x27   :  { %1605 = vmatprep.subr.bf16.mxu1 %v1771_v13  ;;  %v59_v35 = vpack.c.bf16 %v43_v32, %v43_v32  ;;  %v58_v37 = vpack.c.bf16 %v42_v34, %v42_v34  ;;  %1177 = vmatprep.mubr.bf16.mxu1 %v61_v36  ;;  %v1792_v42 = vld [vmem:[#allocation5 + $0x138] sm:$0xff]   ;;  %v1794_v44 = vld [vmem:[#allocation5 + $0x170] sm:$0xff]   ;;  %v1798_v48 = vld [vmem:[#allocation5 + $0x168] sm:$0xff]  }
  0x28   :  { %v1793_v43 = vld [vmem:[#allocation5 + $0x1b8] sm:$0xff]   ;;  %v1795_v45 = vld [vmem:[#allocation5 + $0x1f0] sm:$0xff]   ;;  %v1799_v49 = vld [vmem:[#allocation5 + $0x1e8] sm:$0xff]  }
  0x29   :  { %1584 = vmatpush3.bf16.msra.mxu0 %v1772_v14  ;;  %1137 = vmatprep.mubr.bf16.mxu0 %v59_v35  ;;  %v1796_v46 = vld [vmem:[#allocation5 + $0x130] sm:$0xff]   ;;  %v1800_v50 = vld [vmem:[#allocation5 + $0x128] sm:$0xff]   ;;  %v1802_v52 = vld [vmem:[#allocation5 + $0x160] sm:$0xff]  }
  0x2a   :  { %1606 = vmatpush3.bf16.msra.mxu1 %v1773_v15  ;;  %1585 = vmatprep.subr.bf16.mxu0 %v1774_v16  ;;  %v1797_v47 = vld [vmem:[#allocation5 + $0x1b0] sm:$0xff]   ;;  %v1801_v51 = vld [vmem:[#allocation5 + $0x1a8] sm:$0xff]   ;;  %v1803_v53 = vld [vmem:[#allocation5 + $0x1e0] sm:$0xff]  }
  0x2b   :  { %1607 = vmatprep.subr.bf16.mxu1 %v1775_v17  ;;  %v1804_v54 = vld [vmem:[#allocation5 + $0x120] sm:$0xff]   ;;  %v1806_v56 = vld [vmem:[#allocation5 + $0x158] sm:$0xff]   ;;  %v1810_v60 = vld [vmem:[#allocation5 + $0x150] sm:$0xff]  }
  0x2c   :  { %v1805_v55 = vld [vmem:[#allocation5 + $0x1a0] sm:$0xff]   ;;  %v1807_v57 = vld [vmem:[#allocation5 + $0x1d8] sm:$0xff]   ;;  %v1811_v61 = vld [vmem:[#allocation5 + $0x1d0] sm:$0xff]  }
  0x2d   :  { %1586 = vmatpush3.bf16.msra.mxu0 %v1776_v18  ;;  %v1808_v58 = vld [vmem:[#allocation5 + $0x118] sm:$0xff]   ;;  %v1812_v62 = vld [vmem:[#allocation5 + $0x110] sm:$0xff]   ;;  %v1814_v0 = vld [vmem:[#allocation5 + $0x148] sm:$0xff]  }
  0x2e   :  { %1608 = vmatpush3.bf16.msra.mxu1 %v1777_v19  ;;  %1587 = vmatprep.subr.bf16.mxu0 %v1778_v20  ;;  %v1809_v59 = vld [vmem:[#allocation5 + $0x198] sm:$0xff]   ;;  %v1813_v63 = vld [vmem:[#allocation5 + $0x190] sm:$0xff]   ;;  %v1815_v1 = vld [vmem:[#allocation5 + $0x1c8] sm:$0xff]  }
  0x2f   :  { %1609 = vmatprep.subr.bf16.mxu1 %v1779_v21  ;;  %v1816_v2 = vld [vmem:[#allocation5 + $0x108] sm:$0xff]   ;;  %v1818_v4 = vld [vmem:[#allocation5 + $0x140] sm:$0xff]   ;;  %v49_v9 = vld [vmem:[#allocation2 + $0x38] sm:$0xff] }
  0x30   :  { %v1817_v3 = vld [vmem:[#allocation5 + $0x188] sm:$0xff]   ;;  %v1819_v5 = vld [vmem:[#allocation5 + $0x1c0] sm:$0xff]   ;;  %v65_v11 = vpack.c.bf16 %v49_v9, %v49_v9  ;;  %v48_v13 = vld [vmem:[#allocation2 + $0x30] sm:$0xff] }
  0x31   :  { %1588 = vmatpush3.bf16.msra.mxu0 %v1780_v22  ;;  %v1820_v6 = vld [vmem:[#allocation5 + $0x100] sm:$0xff]   ;;  %v47_v8 = vld [vmem:[#allocation2 + $0x28] sm:$0xff]  ;;  %v64_v15 = vpack.c.bf16 %v48_v13, %v48_v13  ;;  %v1822_v16 = vld [vmem:[#allocation5 + $0x278] sm:$0xff]  }
  0x32   :  { %1610 = vmatpush3.bf16.msra.mxu1 %v1781_v23  ;;  %1589 = vmatprep.subr.bf16.mxu0 %v1782_v24  ;;  %v1821_v7 = vld [vmem:[#allocation5 + $0x180] sm:$0xff]   ;;  %v63_v10 = vpack.c.bf16 %v47_v8, %v47_v8  ;;  %v1823_v17 = vld [vmem:[#allocation5 + $0x2f8] sm:$0xff]   ;;  %v1826_v20 = vld [vmem:[#allocation5 + $0x270] sm:$0xff]  }
  0x33   :  { %1611 = vmatprep.subr.bf16.mxu1 %v1783_v25  ;;  %v46_v12 = vld [vmem:[#allocation2 + $0x20] sm:$0xff]  ;;  %v1824_v18 = vld [vmem:[#allocation5 + $0x238] sm:$0xff]   ;;  %v1827_v21 = vld [vmem:[#allocation5 + $0x2f0] sm:$0xff]  }
  0x34   :  { %v62_v14 = vpack.c.bf16 %v46_v12, %v46_v12  ;;  %v1825_v19 = vld [vmem:[#allocation5 + $0x2b8] sm:$0xff]   ;;  %v1828_v22 = vld [vmem:[#allocation5 + $0x230] sm:$0xff]   ;;  %v1830_v24 = vld [vmem:[#allocation5 + $0x268] sm:$0xff]  }
  0x35   :  { %1590 = vmatpush3.bf16.msra.mxu0 %v1784_v26  ;;  %v1829_v23 = vld [vmem:[#allocation5 + $0x2b0] sm:$0xff]   ;;  %v1831_v25 = vld [vmem:[#allocation5 + $0x2e8] sm:$0xff]   ;;  %v1838_v32 = vld [vmem:[#allocation5 + $0x258] sm:$0xff]  }
  0x36   :  { %1612 = vmatpush3.bf16.msra.mxu1 %v1785_v27  ;;  %1591 = vmatprep.subr.bf16.mxu0 %v1786_v28  ;;  %v1832_v26 = vld [vmem:[#allocation5 + $0x228] sm:$0xff]   ;;  %v1834_v28 = vld [vmem:[#allocation5 + $0x260] sm:$0xff]   ;;  %v1839_v33 = vld [vmem:[#allocation5 + $0x2d8] sm:$0xff]  }
  0x37   :  { %1613 = vmatprep.subr.bf16.mxu1 %v1787_v29  ;;  %v1833_v27 = vld [vmem:[#allocation5 + $0x2a8] sm:$0xff]   ;;  %v1835_v29 = vld [vmem:[#allocation5 + $0x2e0] sm:$0xff]   ;;  %v1840_v34 = vld [vmem:[#allocation5 + $0x218] sm:$0xff]  }
  0x38   :  { %v1841_v35 = vld [vmem:[#allocation5 + $0x298] sm:$0xff]   ;;  %v1842_v36 = vld [vmem:[#allocation5 + $0x250] sm:$0xff]  }
  0x39   :  { %1592 = vmatpush3.bf16.msra.mxu0 %v1788_v30  ;;  %v1836_v30 = vld [vmem:[#allocation5 + $0x220] sm:$0xff]   ;;  %v1844_v38 = vld [vmem:[#allocation5 + $0x210] sm:$0xff]   ;;  %v1870_v8 = vld [vmem:[#allocation5 + $0x358] sm:$0xff]  }
  0x3a   :  { %1614 = vmatpush3.bf16.msra.mxu1 %v1789_v31  ;;  %1621 = vmatprep.subr.bf16.mxu0 %v1790_v40  ;;  %v1837_v31 = vld [vmem:[#allocation5 + $0x2a0] sm:$0xff]   ;;  %v1846_v40 = vld [vmem:[#allocation5 + $0x248] sm:$0xff]   ;;  %v1871_v9 = vld [vmem:[#allocation5 + $0x3d8] sm:$0xff]  }
  0x3b   :  { %1643 = vmatprep.subr.bf16.mxu1 %v1791_v41  ;;  %v1847_v41 = vld [vmem:[#allocation5 + $0x2c8] sm:$0xff]   ;;  %v1874_v12 = vld [vmem:[#allocation5 + $0x350] sm:$0xff]  }
  0x3c   :  { %1138 = vmatmul.mubr.bf16.vlgmr.msra.gmra.mxu0 %v58_v37  ;;  %v1843_v37 = vld [vmem:[#allocation5 + $0x2d0] sm:$0xff]  }
  0x3d   :  { %1178 = vmatmul.mubr.bf16.vlgmr.msra.gmra.mxu1 %v60_v39  ;;  %1622 = vmatpush3.bf16.msra.mxu0 %v1792_v42  ;;  %v1845_v39 = vld [vmem:[#allocation5 + $0x290] sm:$0xff]   ;;  %v1848_v42 = vld [vmem:[#allocation5 + $0x208] sm:$0xff]  }
  0x3e   :  { %1644 = vmatpush3.bf16.msra.mxu1 %v1793_v43  ;;  %1623 = vmatprep.subr.bf16.mxu0 %v1794_v44  ;;  %v1849_v43 = vld [vmem:[#allocation5 + $0x288] sm:$0xff]   ;;  %v1850_v44 = vld [vmem:[#allocation5 + $0x240] sm:$0xff]   ;;  %v1875_v13 = vld [vmem:[#allocation5 + $0x3d0] sm:$0xff]  }
  0x3f   :  { %1645 = vmatprep.subr.bf16.mxu1 %v1795_v45  ;;  %1217 = vmatprep.mubr.bf16.mxu0 %v63_v10  ;;  %v1851_v45 = vld [vmem:[#allocation5 + $0x2c0] sm:$0xff]   ;;  %v1872_v10 = vld [vmem:[#allocation5 + $0x318] sm:$0xff]  }
  0x40   :  { %1257 = vmatprep.mubr.bf16.mxu1 %v65_v11  ;;  %v1873_v11 = vld [vmem:[#allocation5 + $0x398] sm:$0xff]  }
  0x41   :  { %1624 = vmatpush3.bf16.msra.mxu0 %v1796_v46  ;;  %v1852_v46 = vld [vmem:[#allocation5 + $0x200] sm:$0xff]  }
  0x42   :  { %1646 = vmatpush3.bf16.msra.mxu1 %v1797_v47  ;;  %1625 = vmatprep.subr.bf16.mxu0 %v1798_v48  ;;  %v1853_v47 = vld [vmem:[#allocation5 + $0x280] sm:$0xff]   ;;  %v51_v48 = vld [vmem:[#allocation2 + $0x48] sm:$0xff] }
  0x43   :  { %1647 = vmatprep.subr.bf16.mxu1 %v1799_v49  ;;  %v67_v49 = vpack.c.bf16 %v51_v48, %v51_v48 }
  0x45   :  { %1626 = vmatpush3.bf16.msra.mxu0 %v1800_v50  ;;  %v53_v50 = vld [vmem:[#allocation2 + $0x58] sm:$0xff] }
  0x46   :  { %1648 = vmatpush3.bf16.msra.mxu1 %v1801_v51  ;;  %1627 = vmatprep.subr.bf16.mxu0 %v1802_v52  ;;  %v50_v51 = vld [vmem:[#allocation2 + $0x40] sm:$0xff]  ;;  %v52_v52 = vld [vmem:[#allocation2 + $0x50] sm:$0xff] }
  0x47   :  { %1649 = vmatprep.subr.bf16.mxu1 %v1803_v53  ;;  %v69_v53 = vpack.c.bf16 %v53_v50, %v53_v50 }
  0x49   :  { %1628 = vmatpush3.bf16.msra.mxu0 %v1804_v54  ;;  %v66_v54 = vpack.c.bf16 %v50_v51, %v50_v51 }
  0x4a   :  { %1650 = vmatpush3.bf16.msra.mxu1 %v1805_v55  ;;  %1629 = vmatprep.subr.bf16.mxu0 %v1806_v56  ;;  %v68_v55 = vpack.c.bf16 %v52_v52, %v52_v52  ;;  %v1854_v56 = vld [vmem:[#allocation5 + $0x378] sm:$0xff]  }
  0x4b   :  { %1651 = vmatprep.subr.bf16.mxu1 %v1807_v57  ;;  %v1855_v57 = vld [vmem:[#allocation5 + $0x3f8] sm:$0xff]  }
  0x4d   :  { %1630 = vmatpush3.bf16.msra.mxu0 %v1808_v58  ;;  %v1856_v58 = vld [vmem:[#allocation5 + $0x338] sm:$0xff]  }
  0x4e   :  { %1652 = vmatpush3.bf16.msra.mxu1 %v1809_v59  ;;  %1631 = vmatprep.subr.bf16.mxu0 %v1810_v60  ;;  %v1857_v59 = vld [vmem:[#allocation5 + $0x3b8] sm:$0xff]   ;;  %v1858_v60 = vld [vmem:[#allocation5 + $0x370] sm:$0xff]  }
  0x4f   :  { %1653 = vmatprep.subr.bf16.mxu1 %v1811_v61  ;;  %v1859_v61 = vld [vmem:[#allocation5 + $0x3f0] sm:$0xff]  }
  0x51   :  { %1632 = vmatpush3.bf16.msra.mxu0 %v1812_v62  ;;  %v1860_v62 = vld [vmem:[#allocation5 + $0x330] sm:$0xff]  }
  0x52   :  { %1654 = vmatpush3.bf16.msra.mxu1 %v1813_v63  ;;  %1633 = vmatprep.subr.bf16.mxu0 %v1814_v0  ;;  %v1861_v63 = vld [vmem:[#allocation5 + $0x3b0] sm:$0xff]   ;;  %v1862_v0 = vld [vmem:[#allocation5 + $0x368] sm:$0xff]  }
  0x53   :  { %1655 = vmatprep.subr.bf16.mxu1 %v1815_v1  ;;  %v1863_v1 = vld [vmem:[#allocation5 + $0x3e8] sm:$0xff]  }
  0x55   :  { %1634 = vmatpush3.bf16.msra.mxu0 %v1816_v2  ;;  %v1864_v2 = vld [vmem:[#allocation5 + $0x328] sm:$0xff]  }
  0x56   :  { %1656 = vmatpush3.bf16.msra.mxu1 %v1817_v3  ;;  %1635 = vmatprep.subr.bf16.mxu0 %v1818_v4  ;;  %v1865_v3 = vld [vmem:[#allocation5 + $0x3a8] sm:$0xff]   ;;  %v1866_v4 = vld [vmem:[#allocation5 + $0x360] sm:$0xff]  }
  0x57   :  { %1657 = vmatprep.subr.bf16.mxu1 %v1819_v5  ;;  %v1867_v5 = vld [vmem:[#allocation5 + $0x3e0] sm:$0xff]  }
  0x59   :  { %1636 = vmatpush3.bf16.msra.mxu0 %v1820_v6  ;;  %v1868_v6 = vld [vmem:[#allocation5 + $0x320] sm:$0xff]  }
  0x5a   :  { %1658 = vmatpush3.bf16.msra.mxu1 %v1821_v7  ;;  %1665 = vmatprep.subr.bf16.mxu0 %v1822_v16  ;;  %v1869_v7 = vld [vmem:[#allocation5 + $0x3a0] sm:$0xff]   ;;  %v1878_v16 = vld [vmem:[#allocation5 + $0x348] sm:$0xff]  }
  0x5b   :  { %1687 = vmatprep.subr.bf16.mxu1 %v1823_v17  ;;  %v1879_v17 = vld [vmem:[#allocation5 + $0x3c8] sm:$0xff]  }
  0x5c   :  { %1218 = vmatmul.mubr.bf16.vlgmr.msra.gmra.mxu0 %v62_v14  ;;  %v1876_v14 = vld [vmem:[#allocation5 + $0x310] sm:$0xff]  }
  0x5d   :  { %1258 = vmatmul.mubr.bf16.vlgmr.msra.gmra.mxu1 %v64_v15  ;;  %1666 = vmatpush3.bf16.msra.mxu0 %v1824_v18  ;;  %v1877_v15 = vld [vmem:[#allocation5 + $0x390] sm:$0xff]   ;;  %v1880_v18 = vld [vmem:[#allocation5 + $0x308] sm:$0xff]  }
  0x5e   :  { %1688 = vmatpush3.bf16.msra.mxu1 %v1825_v19  ;;  %1667 = vmatprep.subr.bf16.mxu0 %v1826_v20  ;;  %v1881_v19 = vld [vmem:[#allocation5 + $0x388] sm:$0xff]   ;;  %v1882_v20 = vld [vmem:[#allocation5 + $0x340] sm:$0xff]  }
  0x5f   :  { %1689 = vmatprep.subr.bf16.mxu1 %v1827_v21  ;;  %1297 = vmatprep.mubr.bf16.mxu0 %v67_v49  ;;  %v1883_v21 = vld [vmem:[#allocation5 + $0x3c0] sm:$0xff]  }
  0x60   :  { %1337 = vmatprep.mubr.bf16.mxu1 %v69_v53 }
  0x61   :  { %1668 = vmatpush3.bf16.msra.mxu0 %v1828_v22  ;;  %v1884_v22 = vld [vmem:[#allocation5 + $0x300] sm:$0xff]  }
  0x62   :  { %1690 = vmatpush3.bf16.msra.mxu1 %v1829_v23  ;;  %1669 = vmatprep.subr.bf16.mxu0 %v1830_v24  ;;  %v1885_v23 = vld [vmem:[#allocation5 + $0x380] sm:$0xff]   ;;  %v55_v24 = vld [vmem:[#allocation2 + $0x68] sm:$0xff] }
  0x63   :  { %1691 = vmatprep.subr.bf16.mxu1 %v1831_v25  ;;  %v57_v25 = vld [vmem:[#allocation2 + $0x78] sm:$0xff] }
  0x65   :  { %1670 = vmatpush3.bf16.msra.mxu0 %v1832_v26  ;;  %v54_v26 = vld [vmem:[#allocation2 + $0x60] sm:$0xff] }
  0x66   :  { %1692 = vmatpush3.bf16.msra.mxu1 %v1833_v27  ;;  %1671 = vmatprep.subr.bf16.mxu0 %v1834_v28  ;;  %v71_v27 = vpack.c.bf16 %v55_v24, %v55_v24  ;;  %v73_v28 = vpack.c.bf16 %v57_v25, %v57_v25 }
  0x67   :  { %1693 = vmatprep.subr.bf16.mxu1 %v1835_v29  ;;  %v70_v29 = vpack.c.bf16 %v54_v26, %v54_v26 }
  0x69   :  { %1672 = vmatpush3.bf16.msra.mxu0 %v1836_v30  ;;  %v56_v30 = vld [vmem:[#allocation2 + $0x70] sm:$0xff] }
  0x6a   :  { %1694 = vmatpush3.bf16.msra.mxu1 %v1837_v31  ;;  %1673 = vmatprep.subr.bf16.mxu0 %v1838_v32  ;;  %v72_v31 = vpack.c.bf16 %v56_v30, %v56_v30 }
  0x6b   :  { %1695 = vmatprep.subr.bf16.mxu1 %v1839_v33 }
  0x6d   :  { %1674 = vmatpush3.bf16.msra.mxu0 %v1840_v34  ;;  %v1448_v34 = vld [vmem:[%s1995_s2] ss:$0 sm:$0xff]  ;;  %s1960_s2 = smov [#allocation7]  }
  0x6e   :  { %1696 = vmatpush3.bf16.msra.mxu1 %v1841_v35  ;;  %1675 = vmatprep.subr.bf16.mxu0 %v1842_v36  ;;  %s1438_s24 = sshll.u32 %s1960_s2, 4  ;;  %s1439_s24 = int_to_ptr.vmem [resolvable:$true] %s1438_s24 }
  0x6f   :  { %1697 = vmatprep.subr.bf16.mxu1 %v1843_v37  ;;  %s1930_s25 = scalar_lea.vmem %s1439_s24, 128  ;;  %p1935_p11 = scmp.lt.s32.totalorder %s1439_s24, %s1439_s24 }
  0x70   :  { %p1931_p10 = scmp.ne.s32.totalorder %s1439_s24, %s1930_s25  ;;  %p1936_p12 = scmp.lt.s32.totalorder %s1930_s25, %s1930_s25 }
  0x71   :  { %1676 = vmatpush3.bf16.msra.mxu0 %v1844_v38 }
  0x72   :  { %1698 = vmatpush3.bf16.msra.mxu1 %v1845_v39  ;;  %1677 = vmatprep.subr.bf16.mxu0 %v1846_v40  ;;  %p1937_p13 = por %p1936_p12, %p1935_p11 }
  0x73   :  { %1699 = vmatprep.subr.bf16.mxu1 %v1847_v41 }
  0x74   :  { %p1938_p0 = pnand %p1937_p13, %p1931_p10 }
  0x75   :  { %1678 = vmatpush3.bf16.msra.mxu0 %v1848_v42 }
  0x76   :  { %1700 = vmatpush3.bf16.msra.mxu1 %v1849_v43  ;;  %1679 = vmatprep.subr.bf16.mxu0 %v1850_v44 }
  0x77   :  { %1701 = vmatprep.subr.bf16.mxu1 %v1851_v45 }
  0x79   :  { %1680 = vmatpush3.bf16.msra.mxu0 %v1852_v46 }
  0x7a   :  { %1702 = vmatpush3.bf16.msra.mxu1 %v1853_v47  ;;  %1709 = vmatprep.subr.bf16.mxu0 %v1854_v56 }
  0x7b   :  { %1731 = vmatprep.subr.bf16.mxu1 %v1855_v57 }
  0x7c   :  { %1298 = vmatmul.mubr.bf16.vlgmr.msra.gmra.mxu0 %v66_v54 }
  0x7d   :  { %1338 = vmatmul.mubr.bf16.vlgmr.msra.gmra.mxu1 %v68_v55  ;;  %1710 = vmatpush3.bf16.msra.mxu0 %v1856_v58 }
  0x7e   :  { %1732 = vmatpush3.bf16.msra.mxu1 %v1857_v59  ;;  %1711 = vmatprep.subr.bf16.mxu0 %v1858_v60 }
  0x7f   :  { %1733 = vmatprep.subr.bf16.mxu1 %v1859_v61  ;;  %1377 = vmatprep.mubr.bf16.mxu0 %v71_v27 }
  0x80   :  { %1417 = vmatprep.mubr.bf16.mxu1 %v73_v28 }
  0x81   :  { %1712 = vmatpush3.bf16.msra.mxu0 %v1860_v62 }
  0x82   :  { %1734 = vmatpush3.bf16.msra.mxu1 %v1861_v63  ;;  %1713 = vmatprep.subr.bf16.mxu0 %v1862_v0 }
  0x83   :  { %1735 = vmatprep.subr.bf16.mxu1 %v1863_v1 }
  0x85   :  { %1714 = vmatpush3.bf16.msra.mxu0 %v1864_v2 }
  0x86   :  { %1736 = vmatpush3.bf16.msra.mxu1 %v1865_v3  ;;  %1715 = vmatprep.subr.bf16.mxu0 %v1866_v4 }
  0x87   :  { %1737 = vmatprep.subr.bf16.mxu1 %v1867_v5 }
  0x89   :  { %1716 = vmatpush3.bf16.msra.mxu0 %v1868_v6 }
  0x8a   :  { %1738 = vmatpush3.bf16.msra.mxu1 %v1869_v7  ;;  %1717 = vmatprep.subr.bf16.mxu0 %v1870_v8 }
  0x8b   :  { %1739 = vmatprep.subr.bf16.mxu1 %v1871_v9 }
  0x8d   :  { %1718 = vmatpush3.bf16.msra.mxu0 %v1872_v10 }
  0x8e   :  { %1740 = vmatpush3.bf16.msra.mxu1 %v1873_v11  ;;  %1719 = vmatprep.subr.bf16.mxu0 %v1874_v12 }
  0x8f   :  { %1741 = vmatprep.subr.bf16.mxu1 %v1875_v13 }
  0x91   :  { %1720 = vmatpush3.bf16.msra.mxu0 %v1876_v14 }
  0x92   :  { %1742 = vmatpush3.bf16.msra.mxu1 %v1877_v15  ;;  %1721 = vmatprep.subr.bf16.mxu0 %v1878_v16 }
  0x93   :  { %1743 = vmatprep.subr.bf16.mxu1 %v1879_v17 }
  0x95   :  { %1722 = vmatpush3.bf16.msra.mxu0 %v1880_v18 }
  0x96   :  { %1744 = vmatpush3.bf16.msra.mxu1 %v1881_v19  ;;  %1723 = vmatprep.subr.bf16.mxu0 %v1882_v20 }
  0x97   :  { %1745 = vmatprep.subr.bf16.mxu1 %v1883_v21 }
  0x99   :  { %1724 = vmatpush3.bf16.msra.mxu0 %v1884_v22 }
  0x9a   :  { %1746 = vmatpush3.bf16.msra.mxu1 %v1885_v23 }
  0x9c   :  { %1378 = vmatmul.mubr.bf16.vlgmr.msra.gmra.mxu0 %v70_v29 }
  0x9d   :  { %1418 = vmatmul.mubr.bf16.vlgmr.msra.gmra.mxu1 %v72_v31 }
  0xfc   :  { %v1593_v32 = vpop.f32.mrf.mxu0 }
  0xfd   :  { %v1615_v33 = vpop.f32.mrf.mxu1 }
  0xfe   :  { %v1594_v35 = vpop.f32.mrf.mxu0 }
  0xff   :  { %v1616_v36 = vpop.f32.mrf.mxu1  ;;  %v1595_v37 = vadd.f32 %v1594_v35, %v1593_v32 }
 0x100   :  { %v1617_v38 = vadd.f32 %v1616_v36, %v1615_v33  ;;  %v1596_v39 = vpop.f32.mrf.mxu0 }
 0x101   :  { %v1618_v40 = vpop.f32.mrf.mxu1  ;;  %v1140_v41 = vadd.f32 %v1595_v37, %v1448_v34 }
 0x102   :  { %v1597_v42 = vpop.f32.mrf.mxu0 }
 0x103   :  { %v1619_v43 = vpop.f32.mrf.mxu1  ;;  %v1180_v44 = vadd.f32 %v1617_v38, %v1140_v41 }
 0x11c   :  { %v1637_v45 = vpop.f32.mrf.mxu0 }
 0x11d   :  { %v1659_v46 = vpop.f32.mrf.mxu1 }
 0x11e   :  { %v1638_v47 = vpop.f32.mrf.mxu0 }
 0x11f   :  { %v1660_v48 = vpop.f32.mrf.mxu1  ;;  %v1639_v61 = vadd.f32 %v1638_v47, %v1637_v45 }
 0x120   :  { %v1640_v49 = vpop.f32.mrf.mxu0  ;;  %v1661_v63 = vadd.f32 %v1660_v48, %v1659_v46 }
 0x121   :  { %v1662_v50 = vpop.f32.mrf.mxu1  ;;  %v1220_v62 = vadd.f32 %v1639_v61, %v1180_v44 }
 0x122   :  { %v1641_v51 = vpop.f32.mrf.mxu0 }
 0x123   :  { %v1663_v52 = vpop.f32.mrf.mxu1  ;;  %v1260_v1 = vadd.f32 %v1661_v63, %v1220_v62 }
 0x13c   :  { %v1681_v53 = vpop.f32.mrf.mxu0 }
 0x13d   :  { %v1703_v54 = vpop.f32.mrf.mxu1 }
 0x13e   :  { %v1682_v55 = vpop.f32.mrf.mxu0 }
 0x13f   :  { %v1704_v56 = vpop.f32.mrf.mxu1  ;;  %v1683_v0 = vadd.f32 %v1682_v55, %v1681_v53 }
 0x140   :  { %v1684_v57 = vpop.f32.mrf.mxu0  ;;  %v1705_v3 = vadd.f32 %v1704_v56, %v1703_v54 }
 0x141   :  { %v1706_v58 = vpop.f32.mrf.mxu1  ;;  %v1300_v2 = vadd.f32 %v1683_v0, %v1260_v1 }
 0x142   :  { %v1685_v59 = vpop.f32.mrf.mxu0 }
 0x143   :  { %v1707_v60 = vpop.f32.mrf.mxu1  ;;  %v1340_v8 = vadd.f32 %v1705_v3, %v1300_v2 }
 0x15c   :  { %v1725_v4 = vpop.f32.mrf.mxu0 }
 0x15d   :  { %v1747_v5 = vpop.f32.mrf.mxu1 }
 0x15e   :  { %v1726_v6 = vpop.f32.mrf.mxu0 }
 0x15f   :  { %v1748_v7 = vpop.f32.mrf.mxu1  ;;  %v1727_v9 = vadd.f32 %v1726_v6, %v1725_v4 }
 0x160   :  { %v1728_v10 = vpop.f32.mrf.mxu0  ;;  %v1749_v13 = vadd.f32 %v1748_v7, %v1747_v5 }
 0x161   :  { %v1750_v11 = vpop.f32.mrf.mxu1  ;;  %v1380_v12 = vadd.f32 %v1727_v9, %v1340_v8 }
 0x162   :  { %v1729_v14 = vpop.f32.mrf.mxu0 }
 0x163   :  { %v1751_v15 = vpop.f32.mrf.mxu1  ;;  %v1420_v16 = vadd.f32 %v1749_v13, %v1380_v12 }
 0x165   :  { %v1425_v17 = vsub.f32 0.0, %v1420_v16 }
 0x167   :  { %v1426_v18 = vmul.f32 1.442695, %v1425_v17 }
 0x169   :  { %1886 = vpow2.f32 %v1426_v18 }
 0x176   :  { %v1887_v19 = vpop.eup %1886 }
 0x177   :  { %v1428_v20 = vadd.f32 1.0, %v1887_v19 }
 0x179   :  { %1888 = vrcp.f32 %v1428_v20 }
 0x186   :  { %v1889_v21 = vpop.eup %1888 }
 0x187   :  { %1431 = vst [vmem:[#allocation7] sm:$0xff] %v1889_v21 }
 0x188   :  { %1941 = shalt.err (!%p1938_p0)
}
 0x189   :  { %1441 = dma.vmem_to_hbm [thread:$0]  %s1439_s24, 128, %s1996_s3, [#allocation4]  }
 0x18a   :  { %1954 = dma.done.wait [#allocation4], 128  }
 0x18b   :  { %1955 = vsyncadd [#allocation4], 4294967168 }
 0x18c   :  { %1445 = vsyncpa [#allocation3], 1 }
 0x18d   :  { %1446 = vsyncpa [#allocation6], 1 }
 0x18e   :  { %1447 = vsyncpa [#allocation4], 1 }

</bundles_post_ra>
